<compile_context>
chip_gen: v7x
topology: tpu7x:2x2x1
jax: 0.10.0
libtpu: 0.0.40
codegen_flags: <defaults>
</compile_context>

<pallas_src>
import functools

import jax
import jax.numpy as jnp
from jax import lax
from jax.experimental import pallas as pl
from jax.experimental.pallas import tpu as pltpu


def _bottleneck_kernel(x_ref, w1_ref, w2_ref, w3_ref, mask_ref, o_ref, col_ref,
                       *, W, L):
    # x_ref   : (1, Cin, L)      channels-first, images folded along lanes
    # w1_ref  : (PADC, Cin)      conv1 as (out, in), out-rows zero-padded to 8
    # w2_ref  : (width, 9*PADC)  conv2 im2col weight, columns ordered (kh, kw, c)
    # w3_ref  : (Cout, width)    conv3 as (out, in)
    # mask_ref: (9, L)           per-tap validity masks (f32 0/1)
    # o_ref   : (1, Cout, L)
    # col_ref : (9*PADC, L)      VMEM scratch holding the im2col operand
    PADC = w1_ref.shape[0]

    x = x_ref[0]                                                # (Cin, L), reused for residual

    # ---- conv1 (1x1) + ReLU ---------------------------------------------------
    h1 = jnp.dot(w1_ref[...], x, preferred_element_type=jnp.float32)
    h1 = jnp.maximum(h1, 0.0)                                   # (PADC, L), rows >= width are 0

    # ---- conv2 (3x3, stride 1, pad 1): 9 XLU rolls + boundary masks, assembled
    # into an aligned im2col operand and pushed to the MXU once (K = 9*PADC).
    for i in range(9):
        kh, kw = i // 3, i % 3
        d = (kh - 1) * W + (kw - 1)          # input offset of this tap
        if d == 0:
            t = h1                           # center tap: no shift, always valid
        else:
            # tap[p] = h1[(p + d) mod L]; wrap / out-of-bounds positions are
            # exactly the ones zeroed by the precomputed mask row.
            t = pltpu.roll(h1, (-d) % L, axis=1)
            t = t * mask_ref[i:i + 1, :]
        col_ref[i * PADC:(i + 1) * PADC, :] = t                 # aligned 8-row store

    h2 = jnp.dot(w2_ref[...], col_ref[...], preferred_element_type=jnp.float32)
    h2 = jnp.maximum(h2, 0.0)                                   # (width, L)

    # ---- conv3 (1x1) + residual add (identity) + ReLU --------------------------
    out = jnp.dot(w3_ref[...], h2, preferred_element_type=jnp.float32)
    out = jnp.maximum(out + x, 0.0)                             # Cout == Cin
    o_ref[0] = out.astype(o_ref.dtype)


def _choose_images_per_step(n, hw):
    """Batch folding: one fat grid step on single-TC chips; >= 2 steps on v7x."""
    kind = ""
    try:
        kind = jax.devices()[0].device_kind.lower()
    except Exception:
        pass
    # Cap lanes so the (9*PADC, lanes) f32 im2col scratch stays small.
    ips = max(1, min(n, 8192 // max(hw, 1)))
    if "7" in kind:                          # v7x: 2 TensorCores -> keep >= 2 steps
        while ips > 1 and n // ips < 2:
            ips -= 1
    while n % ips != 0:                      # need an even split of the batch
        ips -= 1
    return ips


def bottleneck_nobn(x_nchw, conv1_w, conv2_w, conv3_w):
    """BottleneckNoBN forward. x_nchw: (N, Cin, H, W); conv*_w in PyTorch OIHW."""
    # TODO(synk): stride>1 / groups>1 / dilation>1 / downsample variants are not
    # implemented (the reference module's forward uses the defaults).
    N, Cin, H, W = x_nchw.shape
    width = conv1_w.shape[0]
    cout = conv3_w.shape[0]
    assert cout == Cin, "downsample is None => residual requires Cout == Cin"

    HW = H * W
    PADC = ((width + 7) // 8) * 8            # conv2 K-chunks padded to sublane tiles
    ips = _choose_images_per_step(N, HW)     # images folded along lanes per step
    nblk = N // ips
    L = ips * HW                             # lane width per grid step

    # Channels-first, images folded along lanes: (nblk, Cin, ips*HW).
    x2 = (x_nchw.reshape(nblk, ips, Cin, HW)
          .transpose(0, 2, 1, 3)
          .reshape(nblk, Cin, L))

    # conv1 as (out, in) with zero-padded out rows.
    w1 = jnp.pad(conv1_w[:, :, 0, 0], ((0, PADC - width), (0, 0)))      # (PADC, Cin)
    # conv2 im2col weight: columns ordered (kh, kw, c) with c padded to PADC.
    w2 = jnp.transpose(conv2_w, (0, 2, 3, 1))                           # (O, 3, 3, I)
    w2 = jnp.pad(w2, ((0, 0), (0, 0), (0, 0), (0, PADC - width)))
    w2 = w2.reshape(width, 9 * PADC)
    w3 = conv3_w[:, :, 0, 0]                                            # (Cout, width)

    # Per-tap validity masks (zero-padding boundaries), tiled per folded image.
    hh = jnp.arange(HW, dtype=jnp.int32) // W
    ww = jnp.arange(HW, dtype=jnp.int32) % W
    rows = []
    for kh in range(3):
        for kw in range(3):
            dh, dw = kh - 1, kw - 1
            ok = ((hh + dh >= 0) & (hh + dh < H) & (ww + dw >= 0) & (ww + dw < W))
            rows.append(ok.astype(jnp.float32))
    mask9 = jnp.tile(jnp.stack(rows, axis=0), (1, ips))                 # (9, L)

    kernel = functools.partial(_bottleneck_kernel, W=W, L=L)

    out = pl.pallas_call(
        kernel,
        out_shape=jax.ShapeDtypeStruct((nblk, cout, L), x_nchw.dtype),
        grid_spec=pltpu.PrefetchScalarGridSpec(
            num_scalar_prefetch=0,
            grid=(nblk,),                                      # image-block(s) per step
            in_specs=[
                pl.BlockSpec((1, Cin, L), lambda n: (n, 0, 0)),
                pl.BlockSpec((PADC, Cin), lambda n: (0, 0)),
                pl.BlockSpec((width, 9 * PADC), lambda n: (0, 0)),
                pl.BlockSpec((cout, width), lambda n: (0, 0)),
                pl.BlockSpec((9, L), lambda n: (0, 0)),
            ],
            out_specs=pl.BlockSpec((1, cout, L), lambda n: (n, 0, 0)),
            scratch_shapes=[pltpu.VMEM((9 * PADC, L), jnp.float32)],
        ),
        compiler_params=pltpu.CompilerParams(
            dimension_semantics=("parallel",),                 # shard steps across TCs on v7x
        ),
    )(x2, w1, w2, w3, mask9)

    # (nblk, Cout, ips*HW) -> NCHW.
    return (out.reshape(nblk, cout, ips, HW)
            .transpose(0, 2, 1, 3)
            .reshape(N, cout, H, W))


def _reference(x, conv1_w, conv2_w, conv3_w):
    """Pure-JAX reference mirroring the PyTorch forward (NCHW)."""
    dn = ("NCHW", "OIHW", "NCHW")
    conv = lambda a, w, pad: lax.conv_general_dilated(
        a, w, window_strides=(1, 1), padding=pad, dimension_numbers=dn,
        precision=lax.Precision.HIGHEST)
    out = jax.nn.relu(conv(x, conv1_w, "VALID"))
    out = jax.nn.relu(conv(out, conv2_w, [(1, 1), (1, 1)]))
    out = conv(out, conv3_w, "VALID")
    return jax.nn.relu(out + x)


if __name__ == "__main__":
    # BottleneckNoBN(inplanes=16, planes=4) -> width=4, out channels = 4*4 = 16
    N, inplanes, H, W = 2, 16, 16, 16
    planes = 4
    width = planes                                             # base_width=64, groups=1
    cout = planes * 4

    key = jax.random.PRNGKey(0)
    kx, k1, k2, k3 = jax.random.split(key, 4)
    x = jax.random.normal(kx, (N, inplanes, H, W), jnp.float32)
    conv1_w = 0.1 * jax.random.normal(k1, (width, inplanes, 1, 1), jnp.float32)
    conv2_w = 0.1 * jax.random.normal(k2, (width, width, 3, 3), jnp.float32)
    conv3_w = 0.1 * jax.random.normal(k3, (cout, width, 1, 1), jnp.float32)

    out = bottleneck_nobn(x, conv1_w, conv2_w, conv3_w)
    out = jax.block_until_ready(out)

    ref = _reference(x, conv1_w, conv2_w, conv3_w)
    assert out.shape == ref.shape == (N, cout, H, W)
    err = float(jnp.max(jnp.abs(out - ref)))
    assert jnp.allclose(out, ref, rtol=1e-3, atol=1e-3), (
        "mismatch vs reference: max abs err = %g" % err)

    print("KERNEL_OK")
</pallas_src>

<mosaic_0001>
module attributes {stable_mosaic.version = 11 : i64} {
  func.func @_bottleneck_kernel(%arg0: i32, %arg1: memref<1x16x512xf32, #tpu.memory_space<vmem>>, %arg2: memref<8x16xf32, #tpu.memory_space<vmem>>, %arg3: memref<4x72xf32, #tpu.memory_space<vmem>>, %arg4: memref<16x4xf32, #tpu.memory_space<vmem>>, %arg5: memref<9x512xf32, #tpu.memory_space<vmem>>, %arg6: memref<1x16x512xf32, #tpu.memory_space<vmem>>, %arg7: memref<72x512xf32, #tpu.memory_space<vmem>>) attributes {dimension_semantics = [#tpu.dimension_semantics<parallel>], iteration_bounds = array<i64: 1>, scalar_prefetch = 0 : i64, scratch_operands = 1 : i64, tpu.core_type = #tpu.core_type<tc>, window_params = [{transform_indices = @transform_0, window_bounds = array<i64: 1, 16, 512>}, {pipeline_mode = #tpu.pipeline_mode<synchronous>, transform_indices = @transform_1, window_bounds = array<i64: 8, 16>}, {pipeline_mode = #tpu.pipeline_mode<synchronous>, transform_indices = @transform_2, window_bounds = array<i64: 4, 72>}, {pipeline_mode = #tpu.pipeline_mode<synchronous>, transform_indices = @transform_3, window_bounds = array<i64: 16, 4>}, {pipeline_mode = #tpu.pipeline_mode<synchronous>, transform_indices = @transform_4, window_bounds = array<i64: 9, 512>}, {transform_indices = @transform_5, window_bounds = array<i64: 1, 16, 512>}]} {
    %c0 = arith.constant 0 : index
    %c0_0 = arith.constant 0 : index
    %c0_1 = arith.constant 0 : index
    %0 = vector.load %arg1[%c0, %c0_0, %c0_1] : memref<1x16x512xf32, #tpu.memory_space<vmem>>, vector<1x16x512xf32>
    %1 = vector.shape_cast %0 : vector<1x16x512xf32> to vector<16x512xf32>
    %c0_2 = arith.constant 0 : index
    %c0_3 = arith.constant 0 : index
    %2 = vector.load %arg2[%c0_2, %c0_3] : memref<8x16xf32, #tpu.memory_space<vmem>>, vector<8x16xf32>
    %cst = arith.constant dense<0.000000e+00> : vector<8x512xf32>
    %3 = tpu.matmul %2, %1, %cst {dimension_numbers = #tpu.dot_dimension_numbers<[1], [0], [0], [1], [0, 0, 1, 1], [], []>} : vector<8x16xf32>, vector<16x512xf32>, vector<8x512xf32> -> vector<8x512xf32>
    %cst_4 = arith.constant 0.000000e+00 : f32
    %4 = vector.broadcast %cst_4 : f32 to vector<8x512xf32>
    %5 = arith.maximumf %3, %4 : vector<8x512xf32>
    %c17_i32 = arith.constant 17 : i32
    %6 = tpu.dynamic_rotate %5 by %c17_i32 dim 1 : vector<8x512xf32>, i32 -> vector<8x512xf32>
    %c0_5 = arith.constant 0 : index
    %c0_6 = arith.constant 0 : index
    %7 = vector.load %arg5[%c0_5, %c0_6] : memref<9x512xf32, #tpu.memory_space<vmem>>, vector<1x512xf32>
    %8 = vector.broadcast %7 : vector<1x512xf32> to vector<8x512xf32>
    %9 = arith.mulf %6, %8 : vector<8x512xf32>
    %c0_7 = arith.constant 0 : index
    %c0_8 = arith.constant 0 : index
    %10 = vector.load %arg7[%c0_7, %c0_8] : memref<72x512xf32, #tpu.memory_space<vmem>>, vector<8x512xf32>
    tpu.vector_store %arg7[%c0_7, %c0_8], %9 {strides = array<i32>} : memref<72x512xf32, #tpu.memory_space<vmem>>, vector<8x512xf32>,
    %c16_i32 = arith.constant 16 : i32
    %11 = tpu.dynamic_rotate %5 by %c16_i32 dim 1 : vector<8x512xf32>, i32 -> vector<8x512xf32>
    %c1 = arith.constant 1 : index
    %c0_9 = arith.constant 0 : index
    %12 = vector.load %arg5[%c1, %c0_9] : memref<9x512xf32, #tpu.memory_space<vmem>>, vector<1x512xf32>
    %13 = vector.broadcast %12 : vector<1x512xf32> to vector<8x512xf32>
    %14 = arith.mulf %11, %13 : vector<8x512xf32>
    %c8 = arith.constant 8 : index
    %c0_10 = arith.constant 0 : index
    %15 = vector.load %arg7[%c8, %c0_10] : memref<72x512xf32, #tpu.memory_space<vmem>>, vector<8x512xf32>
    tpu.vector_store %arg7[%c8, %c0_10], %14 {strides = array<i32>} : memref<72x512xf32, #tpu.memory_space<vmem>>, vector<8x512xf32>,
    %c15_i32 = arith.constant 15 : i32
    %16 = tpu.dynamic_rotate %5 by %c15_i32 dim 1 : vector<8x512xf32>, i32 -> vector<8x512xf32>
    %c2 = arith.constant 2 : index
    %c0_11 = arith.constant 0 : index
    %17 = vector.load %arg5[%c2, %c0_11] : memref<9x512xf32, #tpu.memory_space<vmem>>, vector<1x512xf32>
    %18 = vector.broadcast %17 : vector<1x512xf32> to vector<8x512xf32>
    %19 = arith.mulf %16, %18 : vector<8x512xf32>
    %c16 = arith.constant 16 : index
    %c0_12 = arith.constant 0 : index
    %20 = vector.load %arg7[%c16, %c0_12] : memref<72x512xf32, #tpu.memory_space<vmem>>, vector<8x512xf32>
    tpu.vector_store %arg7[%c16, %c0_12], %19 {strides = array<i32>} : memref<72x512xf32, #tpu.memory_space<vmem>>, vector<8x512xf32>,
    %c1_i32 = arith.constant 1 : i32
    %21 = tpu.dynamic_rotate %5 by %c1_i32 dim 1 : vector<8x512xf32>, i32 -> vector<8x512xf32>
    %c3 = arith.constant 3 : index
    %c0_13 = arith.constant 0 : index
    %22 = vector.load %arg5[%c3, %c0_13] : memref<9x512xf32, #tpu.memory_space<vmem>>, vector<1x512xf32>
    %23 = vector.broadcast %22 : vector<1x512xf32> to vector<8x512xf32>
    %24 = arith.mulf %21, %23 : vector<8x512xf32>
    %c24 = arith.constant 24 : index
    %c0_14 = arith.constant 0 : index
    %25 = vector.load %arg7[%c24, %c0_14] : memref<72x512xf32, #tpu.memory_space<vmem>>, vector<8x512xf32>
    tpu.vector_store %arg7[%c24, %c0_14], %24 {strides = array<i32>} : memref<72x512xf32, #tpu.memory_space<vmem>>, vector<8x512xf32>,
    %c32 = arith.constant 32 : index
    %c0_15 = arith.constant 0 : index
    %26 = vector.load %arg7[%c32, %c0_15] : memref<72x512xf32, #tpu.memory_space<vmem>>, vector<8x512xf32>
    tpu.vector_store %arg7[%c32, %c0_15], %5 {strides = array<i32>} : memref<72x512xf32, #tpu.memory_space<vmem>>, vector<8x512xf32>,
    %c511_i32 = arith.constant 511 : i32
    %27 = tpu.dynamic_rotate %5 by %c511_i32 dim 1 : vector<8x512xf32>, i32 -> vector<8x512xf32>
    %c5 = arith.constant 5 : index
    %c0_16 = arith.constant 0 : index
    %28 = vector.load %arg5[%c5, %c0_16] : memref<9x512xf32, #tpu.memory_space<vmem>>, vector<1x512xf32>
    %29 = vector.broadcast %28 : vector<1x512xf32> to vector<8x512xf32>
    %30 = arith.mulf %27, %29 : vector<8x512xf32>
    %c40 = arith.constant 40 : index
    %c0_17 = arith.constant 0 : index
    %31 = vector.load %arg7[%c40, %c0_17] : memref<72x512xf32, #tpu.memory_space<vmem>>, vector<8x512xf32>
    tpu.vector_store %arg7[%c40, %c0_17], %30 {strides = array<i32>} : memref<72x512xf32, #tpu.memory_space<vmem>>, vector<8x512xf32>,
    %c497_i32 = arith.constant 497 : i32
    %32 = tpu.dynamic_rotate %5 by %c497_i32 dim 1 : vector<8x512xf32>, i32 -> vector<8x512xf32>
    %c6 = arith.constant 6 : index
    %c0_18 = arith.constant 0 : index
    %33 = vector.load %arg5[%c6, %c0_18] : memref<9x512xf32, #tpu.memory_space<vmem>>, vector<1x512xf32>
    %34 = vector.broadcast %33 : vector<1x512xf32> to vector<8x512xf32>
    %35 = arith.mulf %32, %34 : vector<8x512xf32>
    %c48 = arith.constant 48 : index
    %c0_19 = arith.constant 0 : index
    %36 = vector.load %arg7[%c48, %c0_19] : memref<72x512xf32, #tpu.memory_space<vmem>>, vector<8x512xf32>
    tpu.vector_store %arg7[%c48, %c0_19], %35 {strides = array<i32>} : memref<72x512xf32, #tpu.memory_space<vmem>>, vector<8x512xf32>,
    %c496_i32 = arith.constant 496 : i32
    %37 = tpu.dynamic_rotate %5 by %c496_i32 dim 1 : vector<8x512xf32>, i32 -> vector<8x512xf32>
    %c7 = arith.constant 7 : index
    %c0_20 = arith.constant 0 : index
    %38 = vector.load %arg5[%c7, %c0_20] : memref<9x512xf32, #tpu.memory_space<vmem>>, vector<1x512xf32>
    %39 = vector.broadcast %38 : vector<1x512xf32> to vector<8x512xf32>
    %40 = arith.mulf %37, %39 : vector<8x512xf32>
    %c56 = arith.constant 56 : index
    %c0_21 = arith.constant 0 : index
    %41 = vector.load %arg7[%c56, %c0_21] : memref<72x512xf32, #tpu.memory_space<vmem>>, vector<8x512xf32>
    tpu.vector_store %arg7[%c56, %c0_21], %40 {strides = array<i32>} : memref<72x512xf32, #tpu.memory_space<vmem>>, vector<8x512xf32>,
    %c495_i32 = arith.constant 495 : i32
    %42 = tpu.dynamic_rotate %5 by %c495_i32 dim 1 : vector<8x512xf32>, i32 -> vector<8x512xf32>
    %c8_22 = arith.constant 8 : index
    %c0_23 = arith.constant 0 : index
    %43 = vector.load %arg5[%c8_22, %c0_23] : memref<9x512xf32, #tpu.memory_space<vmem>>, vector<1x512xf32>
    %44 = vector.broadcast %43 : vector<1x512xf32> to vector<8x512xf32>
    %45 = arith.mulf %42, %44 : vector<8x512xf32>
    %c64 = arith.constant 64 : index
    %c0_24 = arith.constant 0 : index
    %46 = vector.load %arg7[%c64, %c0_24] : memref<72x512xf32, #tpu.memory_space<vmem>>, vector<8x512xf32>
    tpu.vector_store %arg7[%c64, %c0_24], %45 {strides = array<i32>} : memref<72x512xf32, #tpu.memory_space<vmem>>, vector<8x512xf32>,
    %c0_25 = arith.constant 0 : index
    %c0_26 = arith.constant 0 : index
    %47 = vector.load %arg3[%c0_25, %c0_26] : memref<4x72xf32, #tpu.memory_space<vmem>>, vector<4x72xf32>
    %c0_27 = arith.constant 0 : index
    %c0_28 = arith.constant 0 : index
    %48 = vector.load %arg7[%c0_27, %c0_28] : memref<72x512xf32, #tpu.memory_space<vmem>>, vector<72x512xf32>
    %cst_29 = arith.constant dense<0.000000e+00> : vector<4x512xf32>
    %49 = tpu.matmul %47, %48, %cst_29 {dimension_numbers = #tpu.dot_dimension_numbers<[1], [0], [0], [1], [0, 0, 1, 1], [], []>} : vector<4x72xf32>, vector<72x512xf32>, vector<4x512xf32> -> vector<4x512xf32>
    %cst_30 = arith.constant 0.000000e+00 : f32
    %50 = vector.broadcast %cst_30 : f32 to vector<4x512xf32>
    %51 = arith.maximumf %49, %50 : vector<4x512xf32>
    %c0_31 = arith.constant 0 : index
    %c0_32 = arith.constant 0 : index
    %52 = vector.load %arg4[%c0_31, %c0_32] : memref<16x4xf32, #tpu.memory_space<vmem>>, vector<16x4xf32>
    %cst_33 = arith.constant dense<0.000000e+00> : vector<16x512xf32>
    %53 = tpu.matmul %52, %51, %cst_33 {dimension_numbers = #tpu.dot_dimension_numbers<[1], [0], [0], [1], [0, 0, 1, 1], [], []>} : vector<16x4xf32>, vector<4x512xf32>, vector<16x512xf32> -> vector<16x512xf32>
    %54 = arith.addf %53, %1 : vector<16x512xf32>
    %cst_34 = arith.constant 0.000000e+00 : f32
    %55 = vector.broadcast %cst_34 : f32 to vector<16x512xf32>
    %56 = arith.maximumf %54, %55 : vector<16x512xf32>
    %c0_35 = arith.constant 0 : index
    %c0_36 = arith.constant 0 : index
    %c0_37 = arith.constant 0 : index
    %57 = vector.load %arg6[%c0_35, %c0_36, %c0_37] : memref<1x16x512xf32, #tpu.memory_space<vmem>>, vector<1x16x512xf32>
    %58 = vector.shape_cast %57 : vector<1x16x512xf32> to vector<16x512xf32>
    %59 = vector.shape_cast %56 : vector<16x512xf32> to vector<1x16x512xf32>
    tpu.vector_store %arg6[%c0_35, %c0_36, %c0_37], %59 {strides = array<i32>} : memref<1x16x512xf32, #tpu.memory_space<vmem>>, vector<1x16x512xf32>,
    return
  }
  func.func @transform_0(%arg0: i32) -> (i32, i32, i32) {
    %c0_i32 = arith.constant 0 : i32
    %c0_i32_0 = arith.constant 0 : i32
    %c0_i32_1 = arith.constant 0 : i32
    return %arg0, %c0_i32, %c0_i32_0 : i32, i32, i32
  }
  func.func @transform_1(%arg0: i32) -> (i32, i32) {
    %c0_i32 = arith.constant 0 : i32
    %c0_i32_0 = arith.constant 0 : i32
    %c0_i32_1 = arith.constant 0 : i32
    return %c0_i32, %c0_i32_0 : i32, i32
  }
  func.func @transform_2(%arg0: i32) -> (i32, i32) {
    %c0_i32 = arith.constant 0 : i32
    %c0_i32_0 = arith.constant 0 : i32
    %c0_i32_1 = arith.constant 0 : i32
    return %c0_i32, %c0_i32_0 : i32, i32
  }
  func.func @transform_3(%arg0: i32) -> (i32, i32) {
    %c0_i32 = arith.constant 0 : i32
    %c0_i32_0 = arith.constant 0 : i32
    %c0_i32_1 = arith.constant 0 : i32
    return %c0_i32, %c0_i32_0 : i32, i32
  }
  func.func @transform_4(%arg0: i32) -> (i32, i32) {
    %c0_i32 = arith.constant 0 : i32
    %c0_i32_0 = arith.constant 0 : i32
    %c0_i32_1 = arith.constant 0 : i32
    return %c0_i32, %c0_i32_0 : i32, i32
  }
  func.func @transform_5(%arg0: i32) -> (i32, i32, i32) {
    %c0_i32 = arith.constant 0 : i32
    %c0_i32_0 = arith.constant 0 : i32
    %c0_i32_1 = arith.constant 0 : i32
    return %arg0, %c0_i32, %c0_i32_0 : i32, i32, i32
  }
}

</mosaic_0001>

<bundles_post_ra>
// kernel: tpu_custom_call.1
= control target key start
LH: loop header
LB: loop body
LE: loop exit
PB: predicated region body
PF: predicated region fallthrough
CT: control target
= control target key end

     0   :  { %10 = vsyncpa [#allocation4], 0  ;;  %s1433_s0 = inlined_call_operand.hbm [shape: f32[1,16,512], index: 0, kind: input, shape index: {}]   ;;  %s1434_s1 = inlined_call_operand.vmem [shape: f32[8,16], index: 1, kind: input, shape index: {}]   ;;  %s1435_s2 = inlined_call_operand.vmem [shape: f32[4,72], index: 2, kind: input, shape index: {}]   ;;  %s1436_s3 = inlined_call_operand.vmem [shape: f32[16,4], index: 3, kind: input, shape index: {}]   ;;  %s1437_s4 = inlined_call_operand.hbm [shape: f32[9,512], index: 4, kind: input, shape index: {}]   ;;  %s1438_s5 = inlined_call_operand.hbm [shape: f32[1,16,512], index: 5, kind: output, shape index: {}]  }
   0x1   :  { %11 = vsyncpa [#allocation7], 0 }
   0x2   :  { %12 = vsyncpa [#allocation5], 0  ;;  %s1100_s18 = smov [#allocation3]   ;;  %s1028_s22 = scalar_lea.hbm %s1433_s0, 1024 }
   0x3   :  { %s18_s19 = sshll.u32 %s1100_s18, 4  ;;  %p1029_p0 = scmp.ne.s32.totalorder %s1433_s0, %s1028_s22  ;;  %s19_s19 = int_to_ptr.vmem [resolvable:$true] %s18_s19 }
   0x4   :  { %p1032_p1 = scmp.lt.u32.totalorder %s1028_s22, %s1433_s0 }
   0x6   :  { %p1034_p2 = pnand %p1032_p1, %p1029_p0 }
   0x8   :  { %1037 = shalt.err (!%p1034_p2)
}
   0x9   :  { %s1038_s27 = scalar_lea.vmem %s19_s19, 1024  ;;  %p1043_p4 = scmp.lt.s32.totalorder %s19_s19, %s19_s19 }
   0xa   :  { %p1039_p3 = scmp.ne.s32.totalorder %s19_s19, %s1038_s27  ;;  %p1044_p5 = scmp.lt.s32.totalorder %s1038_s27, %s1038_s27 }
   0xc   :  { %p1045_p6 = por %p1044_p5, %p1043_p4 }
   0xe   :  { %p1046_p7 = pnand %p1045_p6, %p1039_p3 }
  0x10   :  { %1049 = shalt.err (!%p1046_p7)
}
  0x11   :  { %s1101_s28 = smov 512   ;;  %s1102_s29 = smov 32  }
  0x12   :  { %24 = dma.hbm_to_vmem [thread:$0]  %s1433_s0, 1024, %s19_s19, [#allocation4], %s1101_s28, %s1101_s28, %s1102_s29  }
  0x13   :  { %s1103_s7 = smov [#allocation6]   ;;  %s1050_s11 = scalar_lea.hbm %s1437_s4, 1024 }
  0x14   :  { %s36_s8 = sshll.u32 %s1103_s7, 4  ;;  %p1051_p8 = scmp.ne.s32.totalorder %s1437_s4, %s1050_s11  ;;  %s37_s8 = int_to_ptr.vmem [resolvable:$true] %s36_s8 }
  0x15   :  { %p1054_p9 = scmp.lt.u32.totalorder %s1050_s11, %s1437_s4 }
  0x17   :  { %p1056_p10 = pnand %p1054_p9, %p1051_p8 }
  0x19   :  { %1059 = shalt.err (!%p1056_p10)
}
  0x1a   :  { %s1060_s16 = scalar_lea.vmem %s37_s8, 1024  ;;  %p1065_p12 = scmp.lt.s32.totalorder %s37_s8, %s37_s8 }
  0x1b   :  { %p1061_p11 = scmp.ne.s32.totalorder %s37_s8, %s1060_s16  ;;  %p1066_p13 = scmp.lt.s32.totalorder %s1060_s16, %s1060_s16 }
  0x1d   :  { %p1067_p0 = por %p1066_p13, %p1065_p12 }
  0x1f   :  { %p1068_p1 = pnand %p1067_p0, %p1061_p11 }
  0x21   :  { %1071 = shalt.err (!%p1068_p1)
}
  0x22   :  { %42 = dma.hbm_to_vmem [thread:$0]  %s1437_s4, 1024, %s37_s8, [#allocation7], %s1101_s28, %s1101_s28, %s1102_s29  }
  0x23   :  { %1094 = dma.done.wait [#allocation4], 1024  }
  0x24   :  { %1095 = vsyncadd [#allocation4], 4294966272 }
  0x25   :  { %1096 = dma.done.wait [#allocation7], 1024  }
  0x26   :  { %1097 = vsyncadd [#allocation7], 4294966272  ;;  %v1104_v0 = vmov 0.0   ;;  %v1176_v1 = vld [vmem:[#allocation3 + $0x8] sm:$0xff]  ;;  %v1180_v3 = vld [vmem:[#allocation3 + $0x18] sm:$0xff]  ;;  %vm58_vm0 = vcmask 130048   ;;  %v216_v22 = vlaneseq }
  0x27   :  { %126 = vmatprep.mubr.f32.mxu0 %v1104_v0  ;;  %197 = vmatprep.mubr.f32.mxu1 %v1104_v0  ;;  %v1178_v2 = vld [vmem:[#allocation3 + $0x28] sm:$0xff]  ;;  %v1184_v5 = vld [vmem:[#allocation3 + $0x38] sm:$0xff]  ;;  %v1186_v6 = vld [vmem:[#allocation3] sm:$0xff]  ;;  %s1105_s19 = smov 17   ;;  %s1107_s20 = smov 15   ;;  %vm602_vm9 = vcmask 588800  }
  0x28   :  { %v974_v4 = vpack.c.bf16 %v1178_v2, %v1176_v1  ;;  %v1188_v7 = vld [vmem:[#allocation3 + $0x20] sm:$0xff]  ;;  %v978_v8 = vpack.c.bf16 %v1184_v5, %v1180_v3  ;;  %v1194_v10 = vld [vmem:[#allocation3 + $0x10] sm:$0xff]  ;;  %s1108_s21 = smov 1   ;;  %s1109_s22 = smov 127   ;;  %v226_v25 = vshrl.u32 %v216_v22, 7  ;;  %v1249_v27 = vand.u32 127, %v216_v22 }
  0x29   :  { %v976_v9 = vpack.c.bf16 %v1188_v7, %v1186_v6  ;;  %v1196_v11 = vld [vmem:[#allocation3 + $0x30] sm:$0xff]  ;;  %v57_v13 = vld [vmem:[%s1434_s1] sm:$0xff]  ;;  %s1106_s1 = smov 16   ;;  %s1110_s23 = smov 113   ;;  %vm761_vm10 = vcmask 1043456   ;;  %vm754_vm11 = vcmask 31744  }
  0x2a   :  { %975 = vmatprep.subr.bf16.mxu0 %v974_v4  ;;  %v980_v12 = vpack.c.bf16 %v1196_v11, %v1194_v10  ;;  %979 = vmatprep.subr.bf16.mxu1 %v978_v8  ;;  %s1111_s24 = smov 112   ;;  %s1112_s25 = smov 111   ;;  %v1251_v29 = vsub.s32 3, %v226_v25  ;;  %v1253_v30 = vld [vmem:[#allocation6] ss:$8 sm:$0xf] }
  0x2b   :  { %977 = vmatpush1.bf16.msra.mxu0 %v976_v9  ;;  %vm218_vm1 = vcmp.lt.s32.totalorder %v1249_v27, 17  ;;  %v267_v33 = vld [vmem:[#allocation6 + $0x1] ss:$8 sm:$0xf]  ;;  %vm261_vm2 = vcmp.lt.s32.totalorder %v1249_v27, 16  ;;  %v1269_v49 = vsub.s32 0, %v226_v25 }
  0x2c   :  { %981 = vmatpush1.bf16.msra.mxu1 %v980_v12  ;;  %v240_v34 = vrot.slane %v1253_v30, %v1251_v29  ;;  %v284_v35 = vrot.slane %v267_v33, %v1251_v29  ;;  %v1271_v50 = vsub.s32 1, %v226_v25  ;;  %v1275_v52 = vsub.s32 2, %v226_v25  ;;  %v1277_v54 = vld [vmem:[#allocation6 + $0x2] ss:$8 sm:$0xf] }
  0x2d   :  { %v272_v55 = vrot.slane %v267_v33, %v1269_v49  ;;  %v228_v56 = vrot.slane %v1253_v30, %v1269_v49  ;;  %v355_v59 = vld [vmem:[#allocation6 + $0x3] ss:$8 sm:$0xf]  ;;  %vm305_vm3 = vcmp.lt.s32.totalorder %v1249_v27, 15  ;;  %v316_v9 = vrot.slane %v1277_v54, %v1269_v49 }
  0x2e   :  { %962 = vmatmul.mubr.msk.f32.vlgmr.msra.gmra.mrb[0].mxu0 %vm58_vm0, %v57_v13  ;;  %v276_v57 = vrot.slane %v267_v33, %v1271_v50  ;;  %v280_v61 = vrot.slane %v267_v33, %v1275_v52  ;;  %v320_v62 = vrot.slane %v1277_v54, %v1271_v50  ;;  %v324_v63 = vrot.slane %v1277_v54, %v1275_v52 }
  0x2f   :  { %963 = vmatmul.mubr.msk.f32.vlgmr.msra.gmra.mrb[0].mxu1 %vm58_vm0, %v57_v13  ;;  %670 = vmatprep.mubr.f32.mxu0 %v1104_v0  ;;  %v328_v12 = vrot.slane %v1277_v54, %v1251_v29  ;;  %vm349_vm4 = vcmp.lt.s32.totalorder %v1249_v27, 1  ;;  %v1299_v13 = vld [vmem:[#allocation6 + $0x5] ss:$8 sm:$0xf]  ;;  %vm397_vm5 = vcmp.lt.s32.totalorder %v1249_v27, 127  ;;  %vm441_vm6 = vcmp.lt.s32.totalorder %v1249_v27, 113 }
  0x30   :  { %741 = vmatprep.mubr.f32.mxu1 %v1104_v0  ;;  %vm485_vm7 = vcmp.lt.s32.totalorder %v1249_v27, 112  ;;  %vm529_vm8 = vcmp.lt.s32.totalorder %v1249_v27, 111 }
 0x101   :  { %v128_v14 = vpop.f32.mrb[0].mxu0 }
 0x102   :  { %v1205_v15 = vmax.f32 %v128_v14, 0.0  ;;  %v199_v16 = vpop.f32.mrb[0].mxu1  ;;  %v130_v17 = vpop.f32.mrb[1].mxu0 }
 0x103   :  { %v1207_v18 = vmax.f32 %v199_v16, 0.0  ;;  %v201_v19 = vpop.f32.mrb[1].mxu1  ;;  %v1215_v21 = vmax.f32 %v130_v17, 0.0  ;;  %v364_v16 = vrot.slane %v355_v59, %v1271_v50  ;;  %v368_v17 = vrot.slane %v355_v59, %v1275_v52 }
 0x104   :  { %208 = vrot.lane.b32.xlu0 %v1205_v15, %s1105_s19  ;;  %v1211_v20 = vmax.f32 %v201_v19, 0.0  ;;  %v360_v19 = vrot.slane %v355_v59, %v1269_v49 }
 0x105   :  { %212 = vrot.lane.b32.xlu1 %v1207_v18, %s1105_s19 }
 0x108   :  { %253 = vrot.lane.b32.xlu0 %v1205_v15, %s1106_s1 }
 0x109   :  { %214 = vrot.lane.b32.xlu1 %v1211_v20, %s1105_s19 }
 0x10c   :  { %257 = vrot.lane.b32.xlu0 %v1207_v18, %s1106_s1 }
 0x10d   :  { %255 = vrot.lane.b32.xlu1 %v1215_v21, %s1106_s1 }
 0x110   :  { %297 = vrot.lane.b32.xlu0 %v1205_v15, %s1107_s20 }
 0x111   :  { %259 = vrot.lane.b32.xlu1 %v1211_v20, %s1106_s1 }
 0x114   :  { %301 = vrot.lane.b32.xlu0 %v1207_v18, %s1107_s20 }
 0x115   :  { %299 = vrot.lane.b32.xlu1 %v1215_v21, %s1107_s20 }
 0x118   :  { %341 = vrot.lane.b32.xlu0 %v1205_v15, %s1108_s21 }
 0x119   :  { %303 = vrot.lane.b32.xlu1 %v1211_v20, %s1107_s20 }
 0x11c   :  { %345 = vrot.lane.b32.xlu0 %v1207_v18, %s1108_s21 }
 0x11d   :  { %343 = vrot.lane.b32.xlu1 %v1215_v21, %s1108_s21 }
 0x120   :  { %389 = vrot.lane.b32.xlu0 %v1205_v15, %s1109_s22 }
 0x121   :  { %347 = vrot.lane.b32.xlu1 %v1211_v20, %s1108_s21 }
 0x124   :  { %393 = vrot.lane.b32.xlu0 %v1207_v18, %s1109_s22 }
 0x125   :  { %391 = vrot.lane.b32.xlu1 %v1215_v21, %s1109_s22 }
 0x128   :  { %433 = vrot.lane.b32.xlu0 %v1205_v15, %s1110_s23 }
 0x129   :  { %395 = vrot.lane.b32.xlu1 %v1211_v20, %s1109_s22 }
 0x12c   :  { %210 = vrot.lane.b32.xlu0 %v1215_v21, %s1105_s19 }
 0x12d   :  { %435 = vrot.lane.b32.xlu1 %v1215_v21, %s1110_s23 }
 0x130   :  { %437 = vrot.lane.b32.xlu0 %v1207_v18, %s1110_s23 }
 0x131   :  { %439 = vrot.lane.b32.xlu1 %v1211_v20, %s1110_s23 }
 0x134   :  { %477 = vrot.lane.b32.xlu0 %v1205_v15, %s1111_s24 }
 0x135   :  { %479 = vrot.lane.b32.xlu1 %v1215_v21, %s1111_s24 }
 0x138   :  { %481 = vrot.lane.b32.xlu0 %v1207_v18, %s1111_s24 }
 0x139   :  { %483 = vrot.lane.b32.xlu1 %v1211_v20, %s1111_s24 }
 0x13c   :  { %521 = vrot.lane.b32.xlu0 %v1205_v15, %s1112_s25 }
 0x13d   :  { %523 = vrot.lane.b32.xlu1 %v1215_v21, %s1112_s25 }
 0x140   :  { %525 = vrot.lane.b32.xlu0 %v1207_v18, %s1112_s25 }
 0x141   :  { %527 = vrot.lane.b32.xlu1 %v1211_v20, %s1112_s25 }
 0x176   :  { %v1245_v23 = vpop.permute.xlu0 %208 }
 0x177   :  { %v1247_v24 = vpop.permute.xlu1 %212 }
 0x17a   :  { %v254_v26 = vpop.permute.xlu0 %253 }
 0x17b   :  { %v215_v28 = vpop.permute.xlu1 %214 }
 0x17c   :  { %v219_v36 = vsel %vm218_vm1, %v1247_v24, %v215_v28  ;;  %v222_v8 = vsel %vm218_vm1, %v215_v28, %v1245_v23  ;;  %v372_v28 = vrot.slane %v355_v59, %v1251_v29 }
 0x17d   :  { %v248_v40 = vmul.f32 %v240_v34, %v219_v36  ;;  %v245_v34 = vmul.f32 %v228_v56, %v222_v8  ;;  %v412_v36 = vrot.slane %v1299_v13, %v1271_v50 }
 0x17e   :  { %v258_v31 = vpop.permute.xlu0 %257 }
 0x17f   :  { %v256_v32 = vpop.permute.xlu1 %255 }
 0x180   :  { %v263_v22 = vsel %vm261_vm2, %v256_v32, %v258_v31  ;;  %v264_v25 = vsel %vm261_vm2, %v254_v26, %v256_v32 }
 0x182   :  { %v1262_v37 = vpop.permute.xlu0 %297 }
 0x183   :  { %v260_v38 = vpop.permute.xlu1 %259 }
 0x184   :  { %v262_v39 = vsel %vm261_vm2, %v258_v31, %v260_v38  ;;  %v265_v58 = vsel %vm261_vm2, %v260_v38, %v254_v26  ;;  %v416_v38 = vrot.slane %v1299_v13, %v1275_v52 }
 0x185   :  { %v292_v41 = vmul.f32 %v284_v35, %v262_v39  ;;  %v289_v14 = vmul.f32 %v272_v55, %v265_v58  ;;  %v408_v35 = vrot.slane %v1299_v13, %v1269_v49  ;;  %v232_v39 = vrot.slane %v1253_v30, %v1271_v50 }
 0x186   :  { %v302_v42 = vpop.permute.xlu0 %301  ;;  %v420_v55 = vrot.slane %v1299_v13, %v1251_v29 }
 0x187   :  { %v300_v43 = vpop.permute.xlu1 %299  ;;  %v998_v44 = vpack.c.bf16 %v292_v41, %v248_v40  ;;  %v236_v40 = vrot.slane %v1253_v30, %v1275_v52  ;;  %v290_v41 = vmul.f32 %v276_v57, %v264_v25  ;;  %v984_v54 = vpack.c.bf16 %v289_v14, %v245_v34 }
 0x188   :  { %v307_v56 = vsel %vm305_vm3, %v300_v43, %v302_v42  ;;  %v308_v58 = vsel %vm305_vm3, %v1262_v37, %v300_v43 }
 0x189   :  { %999 = vmatprep.subr.bf16.mxu1 %v998_v44  ;;  %v291_v44 = vmul.f32 %v280_v61, %v263_v22  ;;  %v335_v25 = vmul.f32 %v324_v63, %v307_v56 }
 0x18a   :  { %v342_v45 = vpop.permute.xlu0 %341 }
 0x18b   :  { %v1267_v46 = vpop.permute.xlu1 %303 }
 0x18c   :  { %v306_v59 = vsel %vm305_vm3, %v302_v42, %v1267_v46 }
 0x18e   :  { %v346_v47 = vpop.permute.xlu0 %345 }
 0x18f   :  { %v344_v48 = vpop.permute.xlu1 %343 }
 0x190   :  { %v352_v26 = vsel %vm349_vm4, %v342_v45, %v344_v48  ;;  %v351_v30 = vsel %vm349_vm4, %v344_v48, %v346_v47 }
 0x191   :  { %v378_v61 = vmul.f32 %v364_v16, %v352_v26  ;;  %v334_v16 = vmul.f32 %v320_v62, %v308_v58  ;;  %v447_v26 = vld [vmem:[#allocation6 + $0x6] ss:$8 sm:$0xf] }
 0x192   :  { %v1273_v51 = vpop.permute.xlu0 %389 }
 0x193   :  { %v348_v53 = vpop.permute.xlu1 %347 }
 0x194   :  { %v350_v32 = vsel %vm349_vm4, %v346_v47, %v348_v53  ;;  %v353_v43 = vsel %vm349_vm4, %v348_v53, %v342_v45 }
 0x195   :  { %v380_v8 = vmul.f32 %v372_v28, %v350_v32  ;;  %v336_v28 = vmul.f32 %v328_v12, %v306_v59 }
 0x196   :  { %v394_v60 = vpop.permute.xlu0 %393 }
 0x197   :  { %v392_v4 = vpop.permute.xlu1 %391  ;;  %v1002_v12 = vpack.c.bf16 %v380_v8, %v336_v28 }
 0x198   :  { %v399_v34 = vsel %vm397_vm5, %v392_v4, %v394_v60 }
 0x199   :  { %v426_v56 = vmul.f32 %v412_v36, %v399_v34 }
 0x19a   :  { %v1310_v33 = vpop.permute.xlu0 %433 }
 0x19b   :  { %v396_v31 = vpop.permute.xlu1 %395 }
 0x19c   :  { %v401_v42 = vsel %vm397_vm5, %v396_v31, %v1273_v51 }
 0x19d   :  { %v428_v62 = vmul.f32 %v420_v55, %v401_v42 }
 0x19e   :  { %v211_v57 = vpop.permute.xlu0 %210 }
 0x19f   :  { %v436_v14 = vpop.permute.xlu1 %435  ;;  %v220_v13 = vsel %vm218_vm1, %v211_v57, %v1247_v24  ;;  %v221_v22 = vsel %vm218_vm1, %v1245_v23, %v211_v57  ;;  %v309_v23 = vsel %vm305_vm3, %v1267_v46, %v1262_v37  ;;  %v379_v24 = vmul.f32 %v368_v17, %v351_v30  ;;  %v491_v46 = vld [vmem:[#allocation6 + $0x7] ss:$8 sm:$0xf] }
 0x1a0   :  { %v246_v47 = vmul.f32 %v232_v39, %v221_v22  ;;  %v247_v48 = vmul.f32 %v236_v40, %v220_v13  ;;  %v377_v57 = vmul.f32 %v360_v19, %v353_v43  ;;  %v398_v39 = vsel %vm397_vm5, %v394_v60, %v396_v31 }
 0x1a1   :  { %v400_v40 = vsel %vm397_vm5, %v1273_v51, %v392_v4  ;;  %v986_v37 = vpack.c.bf16 %v378_v61, %v334_v16  ;;  %v333_v17 = vmul.f32 %v316_v9, %v309_v23  ;;  %v452_v19 = vrot.slane %v447_v26, %v1269_v49 }
 0x1a2   :  { %v1000_v45 = vpack.c.bf16 %v291_v44, %v247_v48  ;;  %v438_v53 = vpop.permute.xlu0 %437  ;;  %v982_v32 = vpack.c.bf16 %v290_v41, %v246_v47  ;;  %v464_v41 = vrot.slane %v447_v26, %v1251_v29  ;;  %v1004_v60 = vpack.c.bf16 %v379_v24, %v335_v25 }
 0x1a3   :  { %v440_v63 = vpop.permute.xlu1 %439  ;;  %v427_v31 = vmul.f32 %v416_v38, %v398_v39  ;;  %v456_v51 = vrot.slane %v447_v26, %v1271_v50  ;;  %v460_v4 = vrot.slane %v447_v26, %v1275_v52  ;;  %v988_v44 = vpack.c.bf16 %v377_v57, %v333_v17 }
 0x1a4   :  { %983 = vmatprep.subr.bf16.mxu0 %v982_v32  ;;  %1001 = vmatpush1.bf16.msra.mxu1 %v1000_v45  ;;  %v425_v55 = vmul.f32 %v408_v35, %v400_v40  ;;  %v496_v9 = vrot.slane %v491_v46, %v1269_v49  ;;  %v1006_v59 = vpack.c.bf16 %v428_v62, %v1211_v20 }
 0x1a5   :  { %985 = vmatpush1.bf16.msra.mxu0 %v984_v54  ;;  %1003 = vmatprep.subr.bf16.mxu1 %v1002_v12  ;;  %v444_v54 = vsel %vm441_vm6, %v1310_v33, %v436_v14  ;;  %v990_v30 = vpack.c.bf16 %v426_v56, %v1215_v21  ;;  %v500_v61 = vrot.slane %v491_v46, %v1271_v50 }
 0x1a6   :  { %987 = vmatprep.subr.bf16.mxu0 %v986_v37  ;;  %v478_v36 = vpop.permute.xlu0 %477  ;;  %v443_v35 = vsel %vm441_vm6, %v436_v14, %v438_v53  ;;  %v508_v8 = vrot.slane %v491_v46, %v1251_v29  ;;  %v504_v20 = vrot.slane %v491_v46, %v1275_v52  ;;  %v1008_v13 = vpack.c.bf16 %v427_v31, %v1207_v18 }
 0x1a7   :  { %v480_v58 = vpop.permute.xlu1 %479  ;;  %v445_v22 = vsel %vm441_vm6, %v440_v63, %v1310_v33  ;;  %v442_v21 = vsel %vm441_vm6, %v438_v53, %v440_v63  ;;  %v992_v42 = vpack.c.bf16 %v425_v55, %v1205_v15  ;;  %v469_v14 = vmul.f32 %v452_v19, %v444_v54  ;;  %v535_v15 = vld [vmem:[#allocation6 + $0x20] ss:$8 sm:$0xf] }
 0x1a8   :  { %v488_v38 = vsel %vm485_vm7, %v478_v36, %v480_v58  ;;  %1005 = vmatpush1.bf16.msra.mxu1 %v1004_v60  ;;  %v470_v25 = vmul.f32 %v456_v51, %v443_v35  ;;  %v472_v34 = vmul.f32 %v464_v41, %v445_v22  ;;  %v471_v23 = vmul.f32 %v460_v4, %v442_v21  ;;  %v753_v54 = vld [vmem:[%s1436_s3 + $0x8] sm:$0xff] }
 0x1a9   :  { %989 = vmatpush1.bf16.msra.mxu0 %v988_v44  ;;  %1007 = vmatprep.subr.bf16.mxu1 %v1006_v59  ;;  %v513_v47 = vmul.f32 %v496_v9, %v488_v38  ;;  %v544_v63 = vrot.slane %v535_v15, %v1271_v50  ;;  %v540_v12 = vrot.slane %v535_v15, %v1269_v49  ;;  %v565_v49 = vld [vmem:[%s1435_s2] sm:$0xf] }
 0x1aa   :  { %991 = vmatprep.subr.bf16.mxu0 %v990_v30  ;;  %v482_v43 = vpop.permute.xlu0 %481  ;;  %v552_v40 = vrot.slane %v535_v15, %v1251_v29  ;;  %v548_v56 = vrot.slane %v535_v15, %v1275_v52  ;;  %v752_v9 = vld [vmem:[%s1436_s3] sm:$0xff]  ;;  %s1113_s3 = smov [#allocation8]  }
 0x1ab   :  { %v484_v48 = vpop.permute.xlu1 %483  ;;  %v487_v16 = vsel %vm485_vm7, %v480_v58, %v482_v43  ;;  %v996_v32 = vpack.c.bf16 %v513_v47, %v469_v14  ;;  %s949_s8 = sshll.u32 %s1113_s3, 4  ;;  %s950_s8 = int_to_ptr.vmem [resolvable:$true] %s949_s8 }
 0x1ac   :  { %v489_v18 = vsel %vm485_vm7, %v484_v48, %v478_v36  ;;  %v486_v33 = vsel %vm485_vm7, %v482_v43, %v484_v48  ;;  %v514_v28 = vmul.f32 %v500_v61, %v487_v16  ;;  %1009 = vmatpush1.bf16.msra.mxu1 %v1008_v13  ;;  %s1072_s9 = scalar_lea.vmem %s950_s8, 1024  ;;  %p1077_p3 = scmp.lt.s32.totalorder %s950_s8, %s950_s8 }
 0x1ad   :  { %v516_v24 = vmul.f32 %v508_v8, %v489_v18  ;;  %v515_v26 = vmul.f32 %v504_v20, %v486_v33  ;;  %993 = vmatpush1.bf16.msra.mxu0 %v992_v42  ;;  %p1073_p2 = scmp.ne.s32.totalorder %s950_s8, %s1072_s9  ;;  %p1078_p4 = scmp.lt.s32.totalorder %s1072_s9, %s1072_s9 }
 0x1ae   :  { %v522_v45 = vpop.permute.xlu0 %521  ;;  %v994_v53 = vpack.c.bf16 %v514_v28, %v470_v25 }
 0x1af   :  { %v1012_v57 = vpack.c.bf16 %v515_v26, %v471_v23  ;;  %v524_v39 = vpop.permute.xlu1 %523  ;;  %v1010_v62 = vpack.c.bf16 %v516_v24, %v472_v34  ;;  %p1079_p5 = por %p1078_p4, %p1077_p3 }
 0x1b0   :  { %995 = vmatprep.subr.bf16.mxu0 %v994_v53  ;;  %v532_v37 = vsel %vm529_vm8, %v522_v45, %v524_v39 }
 0x1b1   :  { %1011 = vmatprep.subr.bf16.mxu1 %v1010_v62  ;;  %997 = vmatpush1.bf16.msra.mxu0 %v996_v32  ;;  %v557_v31 = vmul.f32 %v540_v12, %v532_v37  ;;  %p1080_p6 = pnand %p1079_p5, %p1073_p2 }
 0x1b2   :  { %1013 = vmatpush1.bf16.msra.mxu1 %v1012_v57  ;;  %v526_v46 = vpop.permute.xlu0 %525 }
 0x1b3   :  { %v528_v17 = vpop.permute.xlu1 %527  ;;  %v531_v19 = vsel %vm529_vm8, %v524_v39, %v526_v46 }
 0x1b4   :  { %v533_v41 = vsel %vm529_vm8, %v528_v17, %v522_v45  ;;  %v530_v60 = vsel %vm529_vm8, %v526_v46, %v528_v17  ;;  %v558_v27 = vmul.f32 %v544_v63, %v531_v19 }
 0x1b5   :  { %v560_v51 = vmul.f32 %v552_v40, %v533_v41  ;;  %v559_v4 = vmul.f32 %v548_v56, %v530_v60 }
 0x1b6   :  { %622 = vmatprep.subr.mxu0 %v558_v27 }
 0x1b7   :  { %693 = vmatprep.subr.mxu1 %v560_v51  ;;  %623 = vmatpush1.msra.mxu0 %v557_v31 }
 0x1b8   :  { %694 = vmatpush1.msra.mxu1 %v559_v4  ;;  %964 = vmatmul.mubr.msk.f32.vlgmr.msra.gmra.mrb[2].mxu0 %vm602_vm9, %v565_v49 }
 0x1b9   :  { %965 = vmatmul.mubr.msk.f32.vlgmr.msra.gmra.mrb[2].mxu1 %vm602_vm9, %v565_v49  ;;  %838 = vmatprep.mubr.f32.mxu0 %v1104_v0 }
 0x1ba   :  { %915 = vmatprep.mubr.f32.mxu1 %v1104_v0 }
 0x28b   :  { %v672_v29 = vpop.f32.mrb[2].mxu0 }
 0x28c   :  { %v743_v50 = vpop.f32.mrb[2].mxu1  ;;  %v674_v52 = vpop.f32.mrb[3].mxu0  ;;  %v748_v55 = vmax.f32 %v672_v29, 0.0 }
 0x28d   :  { %v749_v36 = vmax.f32 %v674_v52, 0.0  ;;  %v745_v44 = vpop.f32.mrb[3].mxu1  ;;  %v750_v59 = vmax.f32 %v743_v50, 0.0 }
 0x28e   :  { %v751_v58 = vmax.f32 %v745_v44, 0.0 }
 0x28f   :  { %966 = vmatprep.subr.msk.mxu0 %vm761_vm10, %v749_v36 }
 0x290   :  { %970 = vmatprep.subr.msk.mxu1 %vm761_vm10, %v751_v58  ;;  %967 = vmatpush1.msk.msra.mxu0 %vm761_vm10, %v748_v55 }
 0x291   :  { %971 = vmatpush1.msk.msra.mxu1 %vm761_vm10, %v750_v59  ;;  %968 = vmatmul.mubr.msk.f32.vlgmr.msra.gmra.mrb[4].mxu0 %vm754_vm11, %v752_v9 }
 0x292   :  { %972 = vmatmul.mubr.msk.f32.vlgmr.msra.gmra.mrb[4].mxu1 %vm754_vm11, %v752_v9  ;;  %844 = vmatprep.mubr.f32.mxu0 %v1104_v0 }
 0x293   :  { %921 = vmatprep.mubr.f32.mxu1 %v1104_v0 }
 0x295   :  { %969 = vmatmul.mubr.msk.f32.gmra.mrb[6].mxu0 %vm754_vm11, %v753_v54 }
 0x296   :  { %973 = vmatmul.mubr.msk.f32.gmra.mrb[6].mxu1 %vm754_vm11, %v753_v54 }
 0x364   :  { %v840_v38 = vpop.f32.mrb[4].mxu0 }
 0x365   :  { %v841_v30 = vadd.f32 %v840_v38, %v1186_v6  ;;  %v917_v61 = vpop.f32.mrb[4].mxu1  ;;  %v842_v35 = vpop.f32.mrb[5].mxu0 }
 0x366   :  { %v918_v8 = vadd.f32 %v917_v61, %v1194_v10  ;;  %v843_v20 = vadd.f32 %v842_v35, %v1176_v1  ;;  %v919_v13 = vpop.f32.mrb[5].mxu1 }
 0x367   :  { %v928_v22 = vmax.f32 %v841_v30, 0.0  ;;  %v920_v21 = vadd.f32 %v919_v13, %v1180_v3 }
 0x368   :  { %v930_v43 = vmax.f32 %v918_v8, 0.0  ;;  %v929_v42 = vmax.f32 %v843_v20, 0.0  ;;  %v846_v14 = vpop.f32.mrb[6].mxu0 }
 0x369   :  { %936 = vst [vmem:[#allocation8] sm:$0xff] %v928_v22  ;;  %v931_v0 = vmax.f32 %v920_v21, 0.0  ;;  %v847_v47 = vadd.f32 %v846_v14, %v1188_v7  ;;  %v923_v48 = vpop.f32.mrb[6].mxu1  ;;  %v848_v16 = vpop.f32.mrb[7].mxu0 }
 0x36a   :  { %938 = vst [vmem:[#allocation8 + $0x10] sm:$0xff] %v930_v43  ;;  %937 = vst [vmem:[#allocation8 + $0x8] sm:$0xff] %v929_v42  ;;  %v924_v6 = vadd.f32 %v923_v48, %v1196_v11  ;;  %v849_v10 = vadd.f32 %v848_v16, %v1178_v2  ;;  %v925_v1 = vpop.f32.mrb[7].mxu1 }
 0x36b   :  { %939 = vst [vmem:[#allocation8 + $0x18] sm:$0xff] %v931_v0  ;;  %v932_v3 = vmax.f32 %v847_v47, 0.0  ;;  %v926_v25 = vadd.f32 %v925_v1, %v1184_v5 }
 0x36c   :  { %v934_v18 = vmax.f32 %v924_v6, 0.0  ;;  %v933_v33 = vmax.f32 %v849_v10, 0.0 }
 0x36d   :  { %940 = vst [vmem:[#allocation8 + $0x20] sm:$0xff] %v932_v3  ;;  %v935_v28 = vmax.f32 %v926_v25, 0.0 }
 0x36e   :  { %942 = vst [vmem:[#allocation8 + $0x30] sm:$0xff] %v934_v18  ;;  %941 = vst [vmem:[#allocation8 + $0x28] sm:$0xff] %v933_v33 }
 0x36f   :  { %943 = vst [vmem:[#allocation8 + $0x38] sm:$0xff] %v935_v28 }
 0x370   :  { %1083 = shalt.err (!%p1080_p6)
}
 0x371   :  { %s1084_s12 = scalar_lea.hbm %s1438_s5, 1024 }
 0x372   :  { %p1085_p7 = scmp.ne.s32.totalorder %s1438_s5, %s1084_s12  ;;  %p1088_p8 = scmp.lt.u32.totalorder %s1084_s12, %s1438_s5 }
 0x374   :  { %p1090_p9 = pnand %p1088_p8, %p1085_p7 }
 0x376   :  { %1093 = shalt.err (!%p1090_p9)
}
 0x377   :  { %955 = dma.vmem_to_hbm [thread:$0]  %s950_s8, 1024, %s1438_s5, [#allocation5], %s1101_s28, %s1101_s28, %s1102_s29  }
 0x378   :  { %1098 = dma.done.wait [#allocation5], 1024  }
 0x379   :  { %1099 = vsyncadd [#allocation5], 4294966272 }
 0x37a   :  { %959 = vsyncpa [#allocation4], 1 }
 0x37b   :  { %960 = vsyncpa [#allocation7], 1 }
 0x37c   :  { %961 = vsyncpa [#allocation5], 1 }

</bundles_post_ra>
